<compile_context>
chip_gen: v6e
topology: v6e:2x2x1
jax: 0.10.0
libtpu: 0.0.40
codegen_flags: <defaults>
</compile_context>

<pallas_src>
import math

import jax
import jax.numpy as jnp
from jax import lax
from jax.experimental import pallas as pl
from jax.experimental.pallas import tpu as pltpu


_VMEM_LIMIT = 32 * 1024 * 1024     # explicit scoped-VMEM budget (safe v5e..v7x)
_BLOCK_BUDGET = 8 * 1024 * 1024    # target bytes per (double-buffered) input block


def _acc_dtype(dtype):
    if jnp.issubdtype(dtype, jnp.floating):
        return jnp.float32
    return jnp.int32


# ---------------------------------------------------------------------------
# Sublane-reduce kernel: block (1, kt, bn), reduce along axis 1 (the K axis),
# lanes carry the contiguous `inner` dim.  Running (max, idx) in VMEM scratch
# across the trailing "arbitrary" K grid axis.
# ---------------------------------------------------------------------------
def _make_sublane_kernel(emit_max, acc_dtype):
    def kernel(x_ref, *refs):
        if emit_max:
            idx_ref, max_ref, vmax, vidx = refs
        else:
            idx_ref, vmax, vidx = refs
            max_ref = None

        k = pl.program_id(2)
        nk = pl.num_programs(2)

        x = x_ref[...].astype(acc_dtype)                    # (1, kt, bn)
        kt = x.shape[1]
        tile_max = jnp.max(x, axis=1, keepdims=True)        # (1, 1, bn)
        rows = lax.broadcasted_iota(jnp.int32, x.shape, 1)  # (1, kt, bn)
        masked = jnp.where(x == tile_max, rows, jnp.int32(kt))
        local = jnp.min(masked, axis=1, keepdims=True)      # (1, 1, bn) first hit

        @pl.when(k == 0)
        def _():
            vmax[...] = tile_max
            vidx[...] = local

        @pl.when(k > 0)
        def _():
            better = tile_max > vmax[...]                   # strict '>' keeps first occurrence
            vidx[...] = jnp.where(better, local + k * kt, vidx[...])
            vmax[...] = jnp.where(better, tile_max, vmax[...])

        @pl.when(k == nk - 1)
        def _():
            idx_ref[...] = vidx[...]
            if emit_max:
                max_ref[...] = vmax[...]

    return kernel


def _argmax_sublane(x3, emit_max):
    """x3: (outer, K, inner). Returns int32 (outer, 1, inner) [+ max (outer,1,inner)]."""
    outer, K, inner = x3.shape
    acc = _acc_dtype(x3.dtype)
    elem = x3.dtype.itemsize

    # Lane block: largest multiple-of-128 divisor of `inner` within budget
    # (full extent if `inner` is not 128-divisible — still correct, just ragged).
    if inner % 128 != 0:
        bn = inner
    elif K * inner * elem <= _BLOCK_BUDGET:
        bn = inner
    else:
        bn = 128
        while inner % (bn * 2) == 0 and K * (bn * 2) * elem <= _BLOCK_BUDGET:
            bn *= 2

    # K tile: full K when it fits, else the largest multiple-of-8 divisor that fits.
    kt = K
    if K * bn * elem > _BLOCK_BUDGET and K > 8:
        best = None
        for c in range(8, min(K, 8192) + 1, 8):
            if K % c == 0 and c * bn * elem <= _BLOCK_BUDGET:
                best = c
        if best is not None:
            kt = best
        # TODO(synk): pad K (with -inf) for huge prime reduction dims with no usable divisor.
    nk = K // kt

    idx_sds = jax.ShapeDtypeStruct((outer, 1, inner), jnp.int32)
    idx_spec = pl.BlockSpec((1, 1, bn), lambda o, j, k: (o, 0, j))
    if emit_max:
        out_shape = (idx_sds, jax.ShapeDtypeStruct((outer, 1, inner), acc))
        out_specs = (idx_spec, pl.BlockSpec((1, 1, bn), lambda o, j, k: (o, 0, j)))
    else:
        out_shape = idx_sds
        out_specs = idx_spec

    return pl.pallas_call(
        _make_sublane_kernel(emit_max, acc),
        out_shape=out_shape,
        grid_spec=pltpu.PrefetchScalarGridSpec(
            num_scalar_prefetch=0,
            grid=(outer, inner // bn, nk),
            in_specs=[pl.BlockSpec((1, kt, bn), lambda o, j, k: (o, k, j))],
            out_specs=out_specs,
            scratch_shapes=[pltpu.VMEM((1, 1, bn), acc),
                            pltpu.VMEM((1, 1, bn), jnp.int32)],
        ),
        compiler_params=pltpu.CompilerParams(
            dimension_semantics=("parallel", "parallel", "arbitrary"),
            vmem_limit_bytes=_VMEM_LIMIT),
    )(x3)


# ---------------------------------------------------------------------------
# Lane-reduce kernel (reduction axis already last / innermost in memory).
# ---------------------------------------------------------------------------
def _argmax_lane_kernel(x_ref, o_ref):
    x = x_ref[...]                                          # (bm, K)
    K = x.shape[-1]
    maxv = jnp.max(x, axis=-1, keepdims=True)
    idx = lax.broadcasted_iota(jnp.int32, x.shape, 1)
    masked = jnp.where(x == maxv, idx, jnp.int32(K))
    o_ref[...] = jnp.min(masked, axis=-1, keepdims=True)    # first occurrence


def _argmax_rows(x2d):
    """Row-wise argmax of (M, K) -> (M, 1) int32."""
    M, K = x2d.shape
    elem = x2d.dtype.itemsize
    bm = M
    for cand in (1024, 512, 256, 128, 64, 32, 16, 8):
        if M % cand == 0 and cand * K * elem <= _BLOCK_BUDGET:
            bm = cand
            break
    # TODO(synk): tile K with a running (max, idx) scratch for extremely large last
    # dims and make the (bm, 1) output lane-dense; this path only serves dim == -1.
    return pl.pallas_call(
        _argmax_lane_kernel,
        out_shape=jax.ShapeDtypeStruct((M, 1), jnp.int32),
        grid_spec=pltpu.PrefetchScalarGridSpec(
            num_scalar_prefetch=0,
            grid=(M // bm,),
            in_specs=[pl.BlockSpec((bm, K), lambda i: (i, 0))],
            out_specs=pl.BlockSpec((bm, 1), lambda i: (i, 0)),
        ),
        compiler_params=pltpu.CompilerParams(
            dimension_semantics=("parallel",),
            vmem_limit_bytes=_VMEM_LIMIT),
    )(x2d)


# ---------------------------------------------------------------------------
# Wrappers
# ---------------------------------------------------------------------------
def _argmax_flat(x):
    flat = x.reshape(-1)
    N = flat.shape[0]
    inner = None
    for cand in (1024, 512, 256, 2048, 128):
        if N % cand == 0:
            inner = cand
            break
    if inner is None:
        # TODO(synk): two-stage split for sizes not divisible by 128 (rare); fall
        # back to a single-row lane reduction.
        return _argmax_rows(flat.reshape(1, N)).reshape(())

    K = N // inner
    idx3, max3 = _argmax_sublane(flat.reshape(1, K, inner), emit_max=True)
    col_idx = idx3[0, 0]                                   # (inner,) row per column
    col_max = max3[0, 0]                                   # (inner,)
    flat_idx = col_idx * jnp.int32(inner) + jnp.arange(inner, dtype=jnp.int32)
    gmax = jnp.max(col_max)
    # First occurrence in flat order among columns attaining the global max.
    return jnp.min(jnp.where(col_max == gmax, flat_idx, jnp.int32(N))).reshape(())


def argmax_pallas(x, dim=None):
    """Equivalent of ArgMax(dim)(x) == torch.argmax(x, dim=dim) (int32 indices)."""
    if dim is None:
        return _argmax_flat(x)
    d = dim % x.ndim
    shape = x.shape
    outer = math.prod(shape[:d])
    K = shape[d]
    inner = math.prod(shape[d + 1:])
    out_shape = shape[:d] + shape[d + 1:]
    if inner == 1:
        # Reduction axis is (effectively) innermost: lane-reduce path.
        out = _argmax_rows(x.reshape(outer, K))
    else:
        # Transpose-free sublane-reduce path (zero-copy (outer, K, inner) view).
        out = _argmax_sublane(x.reshape(outer, K, inner), emit_max=False)
    return out.reshape(out_shape)


class ArgMax:
    """JAX/Pallas mirror of the PyTorch ArgMax module."""

    def __init__(self, dim=None):
        self.dim = dim

    def __call__(self, x):
        return argmax_pallas(x, dim=self.dim)


if __name__ == "__main__":
    key = jax.random.PRNGKey(0)
    # NCHW input, small shapes consistent with a segmentation head.
    x = jax.random.normal(key, (2, 4, 16, 16), dtype=jnp.float32)

    # dim=1 (channel argmax) — typical segmentation usage -> sublane-reduce kernel.
    out1 = jax.block_until_ready(ArgMax(dim=1)(x))
    ref1 = jnp.argmax(x, axis=1).astype(jnp.int32)
    assert out1.shape == (2, 16, 16), out1.shape
    assert bool(jnp.all(out1 == ref1)), "dim=1 mismatch vs jnp.argmax"

    # dim=2 — sublane-reduce kernel with ragged (full-extent) lane block.
    out2 = jax.block_until_ready(ArgMax(dim=2)(x))
    ref2 = jnp.argmax(x, axis=2).astype(jnp.int32)
    assert out2.shape == (2, 4, 16), out2.shape
    assert bool(jnp.all(out2 == ref2)), "dim=2 mismatch vs jnp.argmax"

    # dim=-1 (last axis) — lane-reduce kernel.
    out3 = jax.block_until_ready(ArgMax(dim=-1)(x))
    ref3 = jnp.argmax(x, axis=-1).astype(jnp.int32)
    assert out3.shape == (2, 4, 16), out3.shape
    assert bool(jnp.all(out3 == ref3)), "dim=-1 mismatch vs jnp.argmax"

    # dim=None (flattened argmax, the module's default) — two-stage path.
    out_flat = jax.block_until_ready(ArgMax(dim=None)(x))
    ref_flat = jnp.argmax(x).astype(jnp.int32)
    assert out_flat.shape == (), out_flat.shape
    assert int(out_flat) == int(ref_flat), "dim=None mismatch vs jnp.argmax"

    print("KERNEL_OK")
</pallas_src>

<mosaic_0001>
module attributes {stable_mosaic.version = 11 : i64} {
  func.func @kernel(%arg0: i32, %arg1: i32, %arg2: i32, %arg3: memref<1x4x256xf32, #tpu.memory_space<vmem>>, %arg4: memref<1x1x256xi32, #tpu.memory_space<vmem>>, %arg5: memref<1x1x256xf32, #tpu.memory_space<vmem>>, %arg6: memref<1x1x256xi32, #tpu.memory_space<vmem>>) attributes {dimension_semantics = [#tpu.dimension_semantics<parallel>, #tpu.dimension_semantics<parallel>, #tpu.dimension_semantics<arbitrary>], iteration_bounds = array<i64: 2, 1, 1>, scalar_prefetch = 0 : i64, scratch_operands = 2 : i64, tpu.core_type = #tpu.core_type<tc>, window_params = [{transform_indices = @transform_0, window_bounds = array<i64: 1, 4, 256>}, {transform_indices = @transform_1, window_bounds = array<i64: 1, 1, 256>}]} {
    %c0 = arith.constant 0 : index
    %c0_0 = arith.constant 0 : index
    %c0_1 = arith.constant 0 : index
    %0 = vector.load %arg3[%c0, %c0_0, %c0_1] : memref<1x4x256xf32, #tpu.memory_space<vmem>>, vector<1x4x256xf32>
    %cst = arith.constant dense<0xFF800000> : vector<1x256xf32>
    %1 = vector.multi_reduction <maximumf>, %0, %cst [1] : vector<1x4x256xf32> to vector<1x256xf32>
    %2 = vector.shape_cast %1 : vector<1x256xf32> to vector<1x1x256xf32>
    %3 = tpu.iota {dimensions = array<i32: 1>} : vector<1x4x256xi32>
    %4 = vector.broadcast %2 : vector<1x1x256xf32> to vector<1x4x256xf32>
    %5 = arith.cmpf oeq, %0, %4 : vector<1x4x256xf32>
    %c4_i32 = arith.constant 4 : i32
    %6 = vector.broadcast %c4_i32 : i32 to vector<1x4x256xi32>
    %7 = arith.select %5, %3, %6 : vector<1x4x256xi1>, vector<1x4x256xi32>
    %cst_2 = arith.constant dense<2147483647> : vector<1x256xi32>
    %8 = vector.multi_reduction <minsi>, %7, %cst_2 [1] : vector<1x4x256xi32> to vector<1x256xi32>
    %9 = vector.shape_cast %8 : vector<1x256xi32> to vector<1x1x256xi32>
    %c0_i32 = arith.constant 0 : i32
    %10 = arith.cmpi eq, %arg2, %c0_i32 : i32
    %11 = arith.extui %10 : i1 to i32
    %c0_i32_3 = arith.constant 0 : i32
    %12 = arith.cmpi ne, %11, %c0_i32_3 : i32
    scf.if %12 {
      %c0_8 = arith.constant 0 : index
      %c0_9 = arith.constant 0 : index
      %c0_10 = arith.constant 0 : index
      %19 = vector.load %arg5[%c0_8, %c0_9, %c0_10] : memref<1x1x256xf32, #tpu.memory_space<vmem>>, vector<1x1x256xf32>
      tpu.vector_store %arg5[%c0_8, %c0_9, %c0_10], %2 {strides = array<i32>} : memref<1x1x256xf32, #tpu.memory_space<vmem>>, vector<1x1x256xf32>,
      %c0_11 = arith.constant 0 : index
      %c0_12 = arith.constant 0 : index
      %c0_13 = arith.constant 0 : index
      %20 = vector.load %arg6[%c0_11, %c0_12, %c0_13] : memref<1x1x256xi32, #tpu.memory_space<vmem>>, vector<1x1x256xi32>
      tpu.vector_store %arg6[%c0_11, %c0_12, %c0_13], %9 {strides = array<i32>} : memref<1x1x256xi32, #tpu.memory_space<vmem>>, vector<1x1x256xi32>,
    } else {
    }
    %c0_i32_4 = arith.constant 0 : i32
    %13 = arith.cmpi sgt, %arg2, %c0_i32_4 : i32
    %14 = arith.extui %13 : i1 to i32
    %c0_i32_5 = arith.constant 0 : i32
    %15 = arith.cmpi ne, %14, %c0_i32_5 : i32
    scf.if %15 {
      %c0_8 = arith.constant 0 : index
      %c0_9 = arith.constant 0 : index
      %c0_10 = arith.constant 0 : index
      %19 = vector.load %arg5[%c0_8, %c0_9, %c0_10] : memref<1x1x256xf32, #tpu.memory_space<vmem>>, vector<1x1x256xf32>
      %20 = arith.cmpf ogt, %2, %19 : vector<1x1x256xf32>
      %c4_i32_11 = arith.constant 4 : i32
      %21 = arith.muli %arg2, %c4_i32_11 : i32
      %22 = vector.broadcast %21 : i32 to vector<1x1x256xi32>
      %23 = arith.addi %9, %22 : vector<1x1x256xi32>
      %c0_12 = arith.constant 0 : index
      %c0_13 = arith.constant 0 : index
      %c0_14 = arith.constant 0 : index
      %24 = vector.load %arg6[%c0_12, %c0_13, %c0_14] : memref<1x1x256xi32, #tpu.memory_space<vmem>>, vector<1x1x256xi32>
      %25 = arith.select %20, %23, %24 : vector<1x1x256xi1>, vector<1x1x256xi32>
      %c0_15 = arith.constant 0 : index
      %c0_16 = arith.constant 0 : index
      %c0_17 = arith.constant 0 : index
      %26 = vector.load %arg6[%c0_15, %c0_16, %c0_17] : memref<1x1x256xi32, #tpu.memory_space<vmem>>, vector<1x1x256xi32>
      tpu.vector_store %arg6[%c0_15, %c0_16, %c0_17], %25 {strides = array<i32>} : memref<1x1x256xi32, #tpu.memory_space<vmem>>, vector<1x1x256xi32>,
      %c0_18 = arith.constant 0 : index
      %c0_19 = arith.constant 0 : index
      %c0_20 = arith.constant 0 : index
      %27 = vector.load %arg5[%c0_18, %c0_19, %c0_20] : memref<1x1x256xf32, #tpu.memory_space<vmem>>, vector<1x1x256xf32>
      %28 = arith.select %20, %2, %27 : vector<1x1x256xi1>, vector<1x1x256xf32>
      %c0_21 = arith.constant 0 : index
      %c0_22 = arith.constant 0 : index
      %c0_23 = arith.constant 0 : index
      %29 = vector.load %arg5[%c0_21, %c0_22, %c0_23] : memref<1x1x256xf32, #tpu.memory_space<vmem>>, vector<1x1x256xf32>
      tpu.vector_store %arg5[%c0_21, %c0_22, %c0_23], %28 {strides = array<i32>} : memref<1x1x256xf32, #tpu.memory_space<vmem>>, vector<1x1x256xf32>,
    } else {
    }
    %c0_i32_6 = arith.constant 0 : i32
    %16 = arith.cmpi eq, %arg2, %c0_i32_6 : i32
    %17 = arith.extui %16 : i1 to i32
    %c0_i32_7 = arith.constant 0 : i32
    %18 = arith.cmpi ne, %17, %c0_i32_7 : i32
    scf.if %18 {
      %c0_8 = arith.constant 0 : index
      %c0_9 = arith.constant 0 : index
      %c0_10 = arith.constant 0 : index
      %19 = vector.load %arg6[%c0_8, %c0_9, %c0_10] : memref<1x1x256xi32, #tpu.memory_space<vmem>>, vector<1x1x256xi32>
      %c0_11 = arith.constant 0 : index
      %c0_12 = arith.constant 0 : index
      %c0_13 = arith.constant 0 : index
      %20 = vector.load %arg4[%c0_11, %c0_12, %c0_13] : memref<1x1x256xi32, #tpu.memory_space<vmem>>, vector<1x1x256xi32>
      tpu.vector_store %arg4[%c0_11, %c0_12, %c0_13], %19 {strides = array<i32>} : memref<1x1x256xi32, #tpu.memory_space<vmem>>, vector<1x1x256xi32>,
    } else {
    }
    return
  }
  func.func @transform_0(%arg0: i32, %arg1: i32, %arg2: i32) -> (i32, i32, i32) {
    %c0_i32 = arith.constant 0 : i32
    return %arg0, %arg2, %arg1 : i32, i32, i32
  }
  func.func @transform_1(%arg0: i32, %arg1: i32, %arg2: i32) -> (i32, i32, i32) {
    %c0_i32 = arith.constant 0 : i32
    %c0_i32_0 = arith.constant 0 : i32
    return %arg0, %c0_i32, %arg1 : i32, i32, i32
  }
}

</mosaic_0001>

<bundles_post_ra>
// kernel: tpu_custom_call.1
= control target key start
LH: loop header
LB: loop body
LE: loop exit
PB: predicated region body
PF: predicated region fallthrough
CT: control target
= control target key end

     0   :  { %6 = vsyncpa [#allocation5], 0  ;;  %s819_s0 = inlined_call_operand.hbm [shape: f32[2,4,256], index: 0, kind: input, shape index: {}]   ;;  %s820_s1 = inlined_call_operand.hbm [shape: s32[2,1,256], index: 1, kind: output, shape index: {}]  }
   0x1   :  { %8 = vsyncpa [#allocation5 + $0x1], 0 }
   0x2   :  { %9 = vsyncpa [#allocation6], 0 }
   0x3   :  { %11 = vsyncpa [#allocation6 + $0x1], 0  ;;  %s666_s6 = smov 0   ;;  %s668_s7 = smov 0  }
   0x4   :  { %s670_s8 = smov 0   ;;  %s672_s9 = smov 0  }
   0x5   :  { %s674_s10 = smov 0   ;;  %s676_s11 = smov 0  }
   0x6 LB: > { %s460_s12 = sadd.s32 4294967295, %s650_s11   ;;  %s461_s13 = sadd.s32 4294967294, %s650_s11   ;;  %s650_s11 = sphi %s676_s11, %s17_s11   ;;  %s646_s10 = sphi %s674_s10, %s834_s10   ;;  %s642_s9 = sphi %s672_s9, %s833_s9   ;;  %s638_s8 = sphi %s670_s8, %s832_s8   ;;  %s634_s7 = sphi %s668_s7, %s831_s7   ;;  %s630_s6 = sphi %s666_s6, %s830_s6  }
   0x7   : > { %s36_s14 = sadd.s32 1, %s646_s10  ;;  %s47_s15 = sadd.s32 1, %s638_s8 }
   0x8   : > { %p38_p0 = scmp.ge.s32.totalorder %s36_s14, 2  ;;  %p54_p1 = scmp.ne.s32.totalorder %s638_s8, %s634_s7 }
   0x9   : > { %p55_p2 = scmp.eq.s32.totalorder %s650_s11, 0  ;;  %p60_p3 = scmp.ne.s32.totalorder %s634_s7, %s630_s6 }
   0xa   : > { %s836_s14 = smov (%p38_p0, %s36_s14), 0  ;;  %p61_p5 = scmp.eq.s32.totalorder %s460_s12, 0 }
   0xb   : > { %p707_p4 = por %p55_p2, %p54_p1  ;;  %s40_s17 = ssub.s32 %s646_s10, %s836_s14 }
   0xc   : > { %p86_p6 = scmp.eq.s32.totalorder %s460_s12, 1  ;;  %p45_p7 = scmp.eq.s32.totalorder %s40_s17, 0 }
   0xd   : > { %p713_p8 = por %p61_p5, %p60_p3  ;;  %p92_p10 = scmp.eq.s32.totalorder %s461_s13, 1 }
   0xe   : > { %p717_p9 = por %p86_p6, %p54_p1  ;;  %p489_p13 = scmp.lt.s32.totalorder %s650_s11, 2 }
   0xf   : > { %s722_s20 = scalar_select %p45_p7, %s638_s8, %s47_s15  }
  0x10   : > { %p724_p11 = por %p92_p10, %p60_p3  ;;  %s112_s22 = sand.u32 1, %s638_s8  }
  0x11   : > { %s464_s23 = sshll.u32 %s112_s22, 3  ;;  %s475_s24 = sshll.u32 %s646_s10, 7 }
  0x12   : > { %s824_s21 = scalar_select %p724_p11, 1, 0 }
  0x13   : > { %s126_s27 = scalar_lea.hbm %s819_s0, %s475_s24  ;;  %s116_s28 = scalar_lea.vmem [#allocation4], %s464_s23 }
  0x14   : > { %s128_s29 = sshll.u32 %s116_s28, 4  ;;  %p737_p0 = pnand %p489_p13, %p707_p4  ;;  %s129_s29 = int_to_ptr.vmem [resolvable:$true] %s128_s29 }
  0x15   : > { %p467_p1 = scmp.ge.s32.totalorder %s650_s11, 1  ;;  %p133_p2 = scmp.lt.s32.totalorder %s650_s11, 3 }
  0x16   : > { %s113_s2 = scalar_lea.sflag [#allocation5], %s112_s22  ;;  %p544_p3 = pneg %p737_p0 }
  0x17   : > { %s555_s3 = scalar_lea.vmem %s129_s29, 128  ;;  %s652_s4 = smov [#allocation4]  }
  0x18   : > { %p556_p5 = scmp.ne.s32.totalorder %s129_s29, %s555_s3  ;;  %s560_s5 = sshll.u32 %s652_s4, 4  ;;  %s561_s5 = int_to_ptr.vmem [resolvable:$false] %s560_s5 }
  0x19   : > { %s562_s12 = scalar_lea.vmem %s561_s5, 256  ;;  %p563_p10 = scmp.lt.s32.totalorder %s129_s29, %s561_s5 }
  0x1a   : > { %p558_p6 = pnand %p556_p5, %p544_p3  ;;  %p564_p12 = scmp.lt.s32.totalorder %s562_s12, %s555_s3 }
  0x1c   : > { %p559_p7 = pneg %p558_p6  ;;  %p565_p4 = por %p564_p12, %p563_p10 }
  0x1e   : > { %p566_p13 = pnand %p565_p4, %p559_p7 }
  0x20   : > { %569 = shalt.err (!%p566_p13)
}
  0x21   : > { %484 = dma.hbm_to_vmem [thread:$0]  (!%p737_p0), %s126_s27, 128, %s129_s29, %s113_s2  }
  0x22   : > { %p134_p11 = pnand %p467_p1, %p133_p2 }
  0x23   : > { %s752_s13 = sand.u32 (!%p134_p11), 1, %s634_s7  }
  0x24   : > { %137 = sbr.rel (%p134_p11) target bundleno = 104 (0x68), region = 24  ;;  %s468_s15 = sshll.u32 (!%p134_p11), %s752_s13, 3 }
  0x25   : > { %s140_s16 = scalar_lea.sflag (!%p134_p11), [#allocation5], %s752_s13  ;;  %s143_s17 = scalar_lea.vmem (!%p134_p11), [#allocation4], %s468_s15 }
  0x29   : > { %621 = dma.done.wait (%p713_p8), %s140_s16, 128  }
  0x2a   : > { %623 = vsyncadd (%p713_p8), %s140_s16, 4294967168  ;;  %vm168_vm0 = vcmask 1043456   ;;  %v164_v0 = vld [vmem:[%s143_s17] sm:$0xff]  ;;  %v183_v5 = vlaneseq  ;;  %v653_v6 = vmov 839922192   ;;  %s469_s18 = sshll.u32 %s752_s13, 1 }
  0x2b   : > { %v166_v1 = vcombine.high %v164_v0, %v164_v0  ;;  %v169_v2 = vsel %vm168_vm0, %v164_v0, -inf  ;;  %v191_v7 = vunpack.c.l.s4 %v653_v6  ;;  %v654_v16 = vmov 1966171168   ;;  %s161_s22 = scalar_lea.vmem [#allocation7], %s469_s18  ;;  %s476_s24 = sshll.u32 %s642_s9, 5 }
  0x2c   : > { %v170_v3 = vrot.slane %v169_v2, 4  ;;  %v184_v12 = vshrl.u32 %v183_v5, 7  ;;  %v224_v17 = vunpack.c.l.s4 %v654_v16  ;;  %vm763_vm2 = vcmp.lt.s32.totalorder %v183_v5, 256  ;;  %s371_s23 = sshll.u32 %s161_s22, 4  ;;  %s369_s27 = scalar_lea.hbm %s820_s1, %s476_s24  ;;  %s772_s23 = int_to_ptr.vmem [resolvable:$true] %s371_s23 }
  0x2d   : > { %v176_v4 = vsel %vm168_vm0, %v166_v1, -inf  ;;  %v192_v13 = vunpack.c.0.s8 %v191_v7  ;;  %s355_s28 = scalar_lea.sflag [#allocation6], %s752_s13  ;;  %s570_s29 = scalar_lea.vmem %s772_s23, 32 }
  0x2e   : > { %v171_v8 = vmax.f32 %v169_v2, %v170_v3  ;;  %v177_v9 = vrot.slane %v176_v4, 4  ;;  %v225_v23 = vunpack.c.0.s8 %v224_v17  ;;  %p571_p8 = scmp.ne.s32.totalorder %s772_s23, %s570_s29  ;;  %s655_s9 = smov [#allocation7]  }
  0x2f   : > { %v195_v20 = vsub.s32 %v192_v13, %v184_v12  ;;  %s574_s30 = sshll.u32 %s655_s9, 4  ;;  %s575_s30 = int_to_ptr.vmem [resolvable:$false] %s574_s30 }
  0x30   : > { %v172_v10 = vrot.slane %v171_v8, 2  ;;  %v178_v11 = vmax.f32 %v176_v4, %v177_v9  ;;  %v228_v27 = vsub.s32 %v225_v23, %v184_v12  ;;  %p572_p11 = pnand %p571_p8, %p717_p9  ;;  %s576_s2 = scalar_lea.vmem %s575_s30, 64 }
  0x31   : > { %v196_v25 = vrot.slane %v184_v12, %v195_v20  ;;  %p577_p0 = scmp.lt.s32.totalorder %s772_s23, %s575_s30  ;;  %p578_p1 = scmp.lt.s32.totalorder %s576_s2, %s570_s29 }
  0x32   : > { %v173_v14 = vmax.f32 %v171_v8, %v172_v10  ;;  %v179_v15 = vrot.slane %v178_v11, 2  ;;  %p573_p12 = pneg %p572_p11 }
  0x33   : > { %p579_p2 = por %p578_p1, %p577_p0 }
  0x34   : > { %v174_v18 = vrot.slane %v173_v14, 1  ;;  %v180_v19 = vmax.f32 %v178_v11, %v179_v15 }
  0x35   : > { %p580_p3 = pnand %p579_p2, %p573_p12 }
  0x36   : > { %v175_v21 = vmax.f32 %v173_v14, %v174_v18  ;;  %v181_v22 = vrot.slane %v180_v19, 1 }
  0x38   : > { %v182_v24 = vmax.f32 %v180_v19, %v181_v22 }
  0x3a   : > { %v187_v26 = vcombine.low %v175_v21, %v182_v24 }
  0x3c   : > { %vm189_vm1 = vcmp.eq.f32.partialorder %v164_v0, %v187_v26 }
  0x3d   : > { %v197_v28 = vsel %vm189_vm1, %v196_v25, 4 }
  0x3e   : > { %v198_v29 = vcombine.high %v197_v28, %v197_v28  ;;  %v199_v30 = vsel %vm168_vm0, %v197_v28, 2147483647 }
  0x3f   : > { %v200_v31 = vrot.slane %v199_v30, 4 }
  0x40   : > { %v209_v33 = vsel %vm168_vm0, %v198_v29, 2147483647 }
  0x41   : > { %vm201_vm3 = vcmp.lt.s32.totalorder %v199_v30, %v200_v31  ;;  %v210_v34 = vrot.slane %v209_v33, 4 }
  0x42   : > { %v202_v35 = vsel %vm201_vm3, %v199_v30, %v200_v31 }
  0x43   : > { %v203_v36 = vrot.slane %v202_v35, 2  ;;  %vm211_vm4 = vcmp.lt.s32.totalorder %v209_v33, %v210_v34 }
  0x44   : > { %v212_v37 = vsel %vm211_vm4, %v209_v33, %v210_v34 }
  0x45   : > { %vm204_vm5 = vcmp.lt.s32.totalorder %v202_v35, %v203_v36  ;;  %v213_v38 = vrot.slane %v212_v37, 2 }
  0x46   : > { %v205_v39 = vsel %vm204_vm5, %v202_v35, %v203_v36 }
  0x47   : > { %v206_v40 = vrot.slane %v205_v39, 1  ;;  %vm214_vm6 = vcmp.lt.s32.totalorder %v212_v37, %v213_v38 }
  0x48   : > { %v215_v41 = vsel %vm214_vm6, %v212_v37, %v213_v38 }
  0x49   : > { %vm207_vm7 = vcmp.lt.s32.totalorder %v205_v39, %v206_v40  ;;  %v216_v42 = vrot.slane %v215_v41, 1 }
  0x4a   : > { %v208_v43 = vsel %vm207_vm7, %v205_v39, %v206_v40 }
  0x4b   : > { %vm217_vm8 = vcmp.lt.s32.totalorder %v215_v41, %v216_v42 }
  0x4c   : > { %v218_v44 = vsel %vm217_vm8, %v215_v41, %v216_v42 }
  0x4d   : > { %v243_v45 = vcombine.low %v208_v43, %v218_v44 }
  0x4f   : > { %v250_v46 = vrot.slane %v243_v45, %v228_v27 }
  0x51   : > { %v257_v47 = vrot.slane %v250_v46, %v228_v27 }
  0x53   : > { %258 = vst.msk [vmem:[#allocation3] sm:$0x3] %vm763_vm2, %v257_v47 }
  0x5a   : > { %v348_v48 = vld [vmem:[#allocation3] sm:$0x3] }
  0x5b   : > { %353 = vst.msk [vmem:[%s161_s22] sm:$0x3] %vm763_vm2, %v348_v48 }
  0x5c   : > { %583 = shalt.err (!%p580_p3)
}
  0x5d   : > { %s584_s3 = scalar_lea.hbm %s369_s27, 32  ;;  %s588_s12 = scalar_lea.hbm %s820_s1, 64 }
  0x5e   : > { %p585_p5 = scmp.ne.s32.totalorder %s369_s27, %s584_s3  ;;  %p589_p10 = scmp.lt.s32.totalorder %s369_s27, %s820_s1 }
  0x5f   : > { %p590_p4 = scmp.lt.s32.totalorder %s588_s12, %s584_s3 }
  0x60   : > { %p586_p6 = pnand %p585_p5, %p717_p9 }
  0x61   : > { %p591_p13 = por %p590_p4, %p589_p10 }
  0x62   : > { %p587_p7 = pneg %p586_p6 }
  0x64   : > { %p592_p8 = pnand %p591_p13, %p587_p7 }
  0x66   : > { %595 = shalt.err (!%p592_p8)
}
  0x67   : > { %479 = dma.vmem_to_hbm [thread:$0]  (%p717_p9), %s772_s23, 32, %s369_s27, %s355_s28  }
  0x68 PF: > { %s383_s16 = sand.u32 1, %s630_s6   ;;  %p828_p11 = scmp.ne.s32.totalorder %s824_s21, 0 }
  0x69   : > { %p829_p12 = scmp.ge.s32.totalorder %s650_s11, 2  ;;  %s384_s17 = scalar_lea.sflag [#allocation6], %s383_s16 }
  0x6b   : > { %p486_p0 = pnand %p829_p12, %p828_p11 }
  0x6d   : > { %p487_p1 = pneg %p486_p0 }
  0x6f   : > { %625 = dma.done.wait (%p487_p1), %s384_s17, 32  }
  0x70   : > { %627 = vsyncadd (%p487_p1), %s384_s17, 4294967264  ;;  %s17_s11 = sadd.s32 1, %s650_s11   ;;  %s830_s6 = smov %s634_s7 }
  0x71   : > { %p14_p2 = scmp.ge.s32.totalorder %s17_s11, 4   ;;  %s831_s7 = smov %s638_s8 }
  0x72   : > { %s832_s8 = smov %s722_s20  ;;  %s833_s9 = smov %s646_s10 }
  0x73   : > { %s834_s10 = smov %s836_s14  ;;  %16 = sbr.rel (!%p14_p2) target bundleno = 6 (0x6), region = 81 }
  0x78   :  { %389 = vsyncpa [#allocation5], 1 }
  0x79   :  { %391 = vsyncpa [#allocation5 + $0x1], 1 }
  0x7a   :  { %392 = vsyncpa [#allocation6], 1 }
  0x7b   :  { %394 = vsyncpa [#allocation6 + $0x1], 1 }

</bundles_post_ra>
